<compile_context>
chip_gen: v5e
topology: v5e:2x2
jax: 0.10.0
libtpu: 0.0.40
codegen_flags: <defaults>
</compile_context>

<pallas_src>
import functools

import numpy as np
import jax
import jax.numpy as jnp
from jax.experimental import pallas as pl
from jax.experimental.pallas import tpu as pltpu


def _cdiv(a, b):
    return -(-a // b)


def _chunker_kernel(frames_ref, w1_ref, b1_ref, w2_ref, b2_ref,
                    out_ref, cnt_ref, *, chunks_per_tile, stride):
    bb = frames_ref.shape[0]
    d = frames_ref.shape[-1]
    m = bb * chunks_per_tile                      # chunk rows handled this step

    # (bb, chunks*stride, d) -> (m, stride, d); all reductions vectorized.
    x = frames_ref[...].reshape(m, stride, d).astype(jnp.float32)

    # Validity mask for the whole block at once (single cross-lane reduction).
    rowsum = jnp.sum(jnp.abs(x), axis=-1, keepdims=True)        # (m, stride, 1)
    valid = (rowsum != 0.0).astype(jnp.float32)                 # (m, stride, 1)

    # Per-chunk masked sums / counts with one axis-1 reduce each.
    chunk_sum = jnp.sum(x * valid, axis=1)                      # (m, d)
    cnt = jnp.sum(valid, axis=1)                                # (m, 1)
    mean = chunk_sum / jnp.maximum(cnt, 1.0)                    # (m, d) f32

    # proj MLP: Linear -> ReLU -> Linear. bf16 operands, f32 accumulation.
    h = jnp.dot(mean.astype(w1_ref.dtype), w1_ref[...],
                preferred_element_type=jnp.float32) + b1_ref[...]
    h = jnp.maximum(h, 0.0)
    out = jnp.dot(h.astype(w2_ref.dtype), w2_ref[...],
                  preferred_element_type=jnp.float32) + b2_ref[...]

    out_ref[...] = out.reshape(bb, chunks_per_tile, d).astype(out_ref.dtype)
    cnt_ref[...] = cnt.reshape(bb, chunks_per_tile, 1).astype(jnp.int32)


def chunker_pallas(frames, w1, b1, w2, b2, stride):
    """Masked chunk means + proj MLP for every window of every sample.

    Returns:
      out: (B_pad, n_chunks_pad, D) bfloat16 projected chunk vectors
      cnt: (B_pad, n_chunks_pad, 1) int32 count of valid (non-zero) frames
    """
    B, T, D = frames.shape
    n_chunks = _cdiv(T, stride)

    # ---- block-size selection ----------------------------------------------
    # Chunks per time-tile: keep frame tiles <= ~512 rows so double-buffered
    # tiles stay small even on v7x (64 MiB VMEM), and sublane-aligned.
    ct = max(1, min(n_chunks, 512 // max(stride, 1)))
    if ct < n_chunks:
        ct = max(8, (ct // 8) * 8)
        ct = min(ct, n_chunks)
    n_tiles = _cdiv(n_chunks, ct)
    n_chunks_pad = n_tiles * ct
    t_pad = n_chunks_pad * stride

    # Samples per batch block: aim for >=128-row MLP matmuls when B allows,
    # cap the frames tile at ~2 MiB, and keep >= 2 grid steps when B > 1.
    bb = max(1, min(B, _cdiv(128, ct)))
    tile_bytes = ct * stride * D * 4
    bb = max(1, min(bb, (2 << 20) // max(tile_bytes, 1)))
    bb = min(bb, B)
    if _cdiv(B, bb) * n_tiles < 2 and B > 1:
        bb = _cdiv(B, 2)
    b_pad = _cdiv(B, bb) * bb

    if (b_pad, t_pad) != (B, T):
        frames = jnp.pad(frames, ((0, b_pad - B), (0, t_pad - T), (0, 0)))

    # bf16 weights (MXU-native on all current gens); biases stay f32.
    w1 = w1.astype(jnp.bfloat16)
    w2 = w2.astype(jnp.bfloat16)
    b1 = b1.reshape(1, D).astype(jnp.float32)
    b2 = b2.reshape(1, D).astype(jnp.float32)

    kernel = functools.partial(_chunker_kernel, chunks_per_tile=ct, stride=stride)

    out, cnt = pl.pallas_call(
        kernel,
        out_shape=(
            jax.ShapeDtypeStruct((b_pad, n_chunks_pad, D), jnp.bfloat16),
            jax.ShapeDtypeStruct((b_pad, n_chunks_pad, 1), jnp.int32),
        ),
        grid_spec=pltpu.PrefetchScalarGridSpec(
            num_scalar_prefetch=0,
            grid=(b_pad // bb, n_tiles),
            in_specs=[
                pl.BlockSpec((bb, ct * stride, D), lambda bi, ti: (bi, ti, 0)),
                pl.BlockSpec((D, D), lambda bi, ti: (0, 0)),
                pl.BlockSpec((1, D), lambda bi, ti: (0, 0)),
                pl.BlockSpec((D, D), lambda bi, ti: (0, 0)),
                pl.BlockSpec((1, D), lambda bi, ti: (0, 0)),
            ],
            out_specs=[
                pl.BlockSpec((bb, ct, D), lambda bi, ti: (bi, ti, 0)),
                pl.BlockSpec((bb, ct, 1), lambda bi, ti: (bi, ti, 0)),
            ],
        ),
        compiler_params=pltpu.CompilerParams(
            dimension_semantics=("parallel", "parallel")),
    )(frames, w1, b1, w2, b2)
    return out, cnt


@functools.partial(jax.jit, static_argnames=("stride",))
def _chunker_device(frames, w1, b1, w2, b2, stride):
    """Device-side pipeline: kernel + fp16 cast + per-sample valid lengths."""
    out_bf, cnt = chunker_pallas(frames, w1, b1, w2, b2, stride)
    out = out_bf.astype(jnp.float16)
    nonzero = cnt[..., 0] > 0                                   # (B_pad, n_chunks_pad)
    not_nonzero = jnp.logical_not(nonzero)
    has_zero = jnp.any(not_nonzero, axis=1)
    first_zero = jnp.argmax(not_nonzero.astype(jnp.int32), axis=1)
    lengths = jnp.where(has_zero, first_zero, nonzero.shape[1]).astype(jnp.int32)
    return out, lengths


def fixed_stride_mean_chunker_forward(frames, params, stride=8):
    """Full forward: per-sample list of (num_chunks_b, D) float16 arrays."""
    B, T, D = frames.shape
    n_chunks = _cdiv(T, stride)
    w1, b1, w2, b2 = params
    out, lengths = _chunker_device(frames, w1, b1, w2, b2, stride)
    # Only the tiny (B_pad,) lengths vector is synced to host; chunk vectors
    # stay on device and are sliced to build the ragged per-sample list.
    lengths = np.asarray(jax.device_get(lengths))
    results = []
    for b in range(B):
        k = int(min(int(lengths[b]), n_chunks))
        if k == 0:
            # Reference appends a single zero vector in the input dtype.
            results.append(jnp.zeros((1, D), dtype=frames.dtype))
        else:
            results.append(out[b, :k])
    return results


def reference_forward(frames, params, stride=8):
    """Pure numpy re-implementation of the PyTorch module (for checking)."""
    frames = np.asarray(frames, dtype=np.float32)
    w1, b1, w2, b2 = [np.asarray(p, dtype=np.float32) for p in params]
    B, T, D = frames.shape
    out_all = []
    for b in range(B):
        chunks = []
        for start in range(0, T, stride):
            end = min(start + stride, T)
            win = frames[b, start:end]
            if np.all(win == 0):
                break
            pad = np.abs(win).sum(-1) == 0
            valid = (~pad).astype(np.float32)[:, None]
            denom = max(valid.sum(), 1.0)
            mean = (win * valid).sum(0) / denom
            h = np.maximum(mean @ w1 + b1, 0.0)
            rep = h @ w2 + b2
            chunks.append(rep.astype(np.float16))
        if not chunks:
            chunks.append(np.zeros(D, dtype=frames.dtype))
        out_all.append(np.stack(chunks, 0))
    return out_all


if __name__ == "__main__":
    key = jax.random.PRNGKey(0)
    B, T, D, stride = 2, 20, 32, 8
    k1, k2, k3, k4, k5 = jax.random.split(key, 5)

    frames = jax.random.normal(k1, (B, T, D), dtype=jnp.float32)
    # Sample 1 only has 10 valid frames (rest zero padding) to exercise the
    # partial-window masked mean and the "break at all-zero window" path.
    valid_len = jnp.where(jnp.arange(B) == 1, 10, T)                 # (B,)
    mask = (jnp.arange(T)[None, :, None] < valid_len[:, None, None]).astype(frames.dtype)
    frames = frames * mask

    # Deterministic parameter init (nn.Linear(dim, dim) x2, stored as x @ W + b).
    w1 = jax.random.normal(k2, (D, D), dtype=jnp.float32) / np.sqrt(D)
    b1 = jax.random.normal(k3, (D,), dtype=jnp.float32) * 0.1
    w2 = jax.random.normal(k4, (D, D), dtype=jnp.float32) / np.sqrt(D)
    b2 = jax.random.normal(k5, (D,), dtype=jnp.float32) * 0.1
    params = (w1, b1, w2, b2)

    outs = fixed_stride_mean_chunker_forward(frames, params, stride=stride)
    for o in outs:
        jax.block_until_ready(o)

    refs = reference_forward(np.asarray(frames), params, stride=stride)
    assert len(outs) == len(refs)
    for o, r in zip(outs, refs):
        assert o.shape == r.shape, (o.shape, r.shape)
        # Tolerance covers bf16 matmul operands + bf16->fp16 output rounding.
        np.testing.assert_allclose(
            np.asarray(o, dtype=np.float32),
            np.asarray(r, dtype=np.float32),
            rtol=2e-2, atol=2e-2,
        )

    print("KERNEL_OK")
</pallas_src>

<mosaic_0001>
module attributes {stable_mosaic.version = 11 : i64} {
  func.func @_chunker_kernel(%arg0: i32, %arg1: i32, %arg2: memref<1x24x32xf32, #tpu.memory_space<vmem>>, %arg3: memref<32x32xbf16, #tpu.memory_space<vmem>>, %arg4: memref<1x32xf32, #tpu.memory_space<vmem>>, %arg5: memref<32x32xbf16, #tpu.memory_space<vmem>>, %arg6: memref<1x32xf32, #tpu.memory_space<vmem>>, %arg7: memref<1x3x32xbf16, #tpu.memory_space<vmem>>, %arg8: memref<1x3x1xi32, #tpu.memory_space<vmem>>) attributes {dimension_semantics = [#tpu.dimension_semantics<parallel>, #tpu.dimension_semantics<parallel>], iteration_bounds = array<i64: 2, 1>, scalar_prefetch = 0 : i64, scratch_operands = 0 : i64, tpu.core_type = #tpu.core_type<tc>, window_params = [{transform_indices = @transform_0, window_bounds = array<i64: 1, 24, 32>}, {pipeline_mode = #tpu.pipeline_mode<synchronous>, transform_indices = @transform_1, window_bounds = array<i64: 32, 32>}, {pipeline_mode = #tpu.pipeline_mode<synchronous>, transform_indices = @transform_2, window_bounds = array<i64: 1, 32>}, {pipeline_mode = #tpu.pipeline_mode<synchronous>, transform_indices = @transform_3, window_bounds = array<i64: 32, 32>}, {pipeline_mode = #tpu.pipeline_mode<synchronous>, transform_indices = @transform_4, window_bounds = array<i64: 1, 32>}, {transform_indices = @transform_5, window_bounds = array<i64: 1, 3, 32>}, {transform_indices = @transform_6, window_bounds = array<i64: 1, 3, 1>}]} {
    %c0 = arith.constant 0 : index
    %c0_0 = arith.constant 0 : index
    %c0_1 = arith.constant 0 : index
    %0 = vector.load %arg2[%c0, %c0_0, %c0_1] : memref<1x24x32xf32, #tpu.memory_space<vmem>>, vector<1x24x32xf32>
    %1 = vector.shape_cast %0 : vector<1x24x32xf32> to vector<3x8x32xf32>
    %2 = math.absf %1 : vector<3x8x32xf32>
    %cst = arith.constant dense<0.000000e+00> : vector<3x8xf32>
    %3 = vector.multi_reduction <add>, %2, %cst [2] : vector<3x8x32xf32> to vector<3x8xf32>
    %4 = vector.shape_cast %3 : vector<3x8xf32> to vector<3x8x1xf32>
    %cst_2 = arith.constant 0.000000e+00 : f32
    %5 = vector.broadcast %cst_2 : f32 to vector<3x8x1xf32>
    %6 = arith.cmpf one, %4, %5 : vector<3x8x1xf32>
    %7 = arith.extui %6 : vector<3x8x1xi1> to vector<3x8x1xi32>
    %8 = arith.sitofp %7 : vector<3x8x1xi32> to vector<3x8x1xf32>
    %9 = vector.broadcast %8 : vector<3x8x1xf32> to vector<3x8x32xf32>
    %10 = arith.mulf %1, %9 : vector<3x8x32xf32>
    %cst_3 = arith.constant dense<0.000000e+00> : vector<3x32xf32>
    %11 = vector.multi_reduction <add>, %10, %cst_3 [1] : vector<3x8x32xf32> to vector<3x32xf32>
    %cst_4 = arith.constant dense<0.000000e+00> : vector<3x1xf32>
    %12 = vector.multi_reduction <add>, %8, %cst_4 [1] : vector<3x8x1xf32> to vector<3x1xf32>
    %cst_5 = arith.constant 1.000000e+00 : f32
    %13 = vector.broadcast %cst_5 : f32 to vector<3x1xf32>
    %14 = arith.maximumf %12, %13 : vector<3x1xf32>
    %15 = vector.broadcast %14 : vector<3x1xf32> to vector<3x32xf32>
    %16 = arith.divf %11, %15 : vector<3x32xf32>
    %17 = arith.truncf %16 : vector<3x32xf32> to vector<3x32xbf16>
    %c0_6 = arith.constant 0 : index
    %c0_7 = arith.constant 0 : index
    %18 = vector.load %arg3[%c0_6, %c0_7] : memref<32x32xbf16, #tpu.memory_space<vmem>>, vector<32x32xbf16>
    %cst_8 = arith.constant dense<0.000000e+00> : vector<3x32xf32>
    %19 = tpu.matmul %17, %18, %cst_8 {dimension_numbers = #tpu.dot_dimension_numbers<[1], [0], [0], [1], [0, 0, 1, 1], [], []>} : vector<3x32xbf16>, vector<32x32xbf16>, vector<3x32xf32> -> vector<3x32xf32>
    %c0_9 = arith.constant 0 : index
    %c0_10 = arith.constant 0 : index
    %20 = vector.load %arg4[%c0_9, %c0_10] : memref<1x32xf32, #tpu.memory_space<vmem>>, vector<1x32xf32>
    %21 = vector.broadcast %20 : vector<1x32xf32> to vector<3x32xf32>
    %22 = arith.addf %19, %21 : vector<3x32xf32>
    %cst_11 = arith.constant 0.000000e+00 : f32
    %23 = vector.broadcast %cst_11 : f32 to vector<3x32xf32>
    %24 = arith.maximumf %22, %23 : vector<3x32xf32>
    %25 = arith.truncf %24 : vector<3x32xf32> to vector<3x32xbf16>
    %c0_12 = arith.constant 0 : index
    %c0_13 = arith.constant 0 : index
    %26 = vector.load %arg5[%c0_12, %c0_13] : memref<32x32xbf16, #tpu.memory_space<vmem>>, vector<32x32xbf16>
    %cst_14 = arith.constant dense<0.000000e+00> : vector<3x32xf32>
    %27 = tpu.matmul %25, %26, %cst_14 {dimension_numbers = #tpu.dot_dimension_numbers<[1], [0], [0], [1], [0, 0, 1, 1], [], []>} : vector<3x32xbf16>, vector<32x32xbf16>, vector<3x32xf32> -> vector<3x32xf32>
    %c0_15 = arith.constant 0 : index
    %c0_16 = arith.constant 0 : index
    %28 = vector.load %arg6[%c0_15, %c0_16] : memref<1x32xf32, #tpu.memory_space<vmem>>, vector<1x32xf32>
    %29 = vector.broadcast %28 : vector<1x32xf32> to vector<3x32xf32>
    %30 = arith.addf %27, %29 : vector<3x32xf32>
    %31 = vector.shape_cast %30 : vector<3x32xf32> to vector<1x3x32xf32>
    %32 = arith.truncf %31 : vector<1x3x32xf32> to vector<1x3x32xbf16>
    %c0_17 = arith.constant 0 : index
    %c0_18 = arith.constant 0 : index
    %c0_19 = arith.constant 0 : index
    %33 = vector.load %arg7[%c0_17, %c0_18, %c0_19] : memref<1x3x32xbf16, #tpu.memory_space<vmem>>, vector<1x3x32xbf16>
    tpu.vector_store %arg7[%c0_17, %c0_18, %c0_19], %32 {strides = array<i32>} : memref<1x3x32xbf16, #tpu.memory_space<vmem>>, vector<1x3x32xbf16>,
    %34 = vector.shape_cast %12 : vector<3x1xf32> to vector<1x3x1xf32>
    %35 = arith.fptosi %34 : vector<1x3x1xf32> to vector<1x3x1xi32>
    %c0_20 = arith.constant 0 : index
    %c0_21 = arith.constant 0 : index
    %c0_22 = arith.constant 0 : index
    %36 = vector.load %arg8[%c0_20, %c0_21, %c0_22] : memref<1x3x1xi32, #tpu.memory_space<vmem>>, vector<1x3x1xi32>
    tpu.vector_store %arg8[%c0_20, %c0_21, %c0_22], %35 {strides = array<i32>} : memref<1x3x1xi32, #tpu.memory_space<vmem>>, vector<1x3x1xi32>,
    return
  }
  func.func @transform_0(%arg0: i32, %arg1: i32) -> (i32, i32, i32) {
    %c0_i32 = arith.constant 0 : i32
    %c0_i32_0 = arith.constant 0 : i32
    return %arg0, %arg1, %c0_i32 : i32, i32, i32
  }
  func.func @transform_1(%arg0: i32, %arg1: i32) -> (i32, i32) {
    %c0_i32 = arith.constant 0 : i32
    %c0_i32_0 = arith.constant 0 : i32
    %c0_i32_1 = arith.constant 0 : i32
    return %c0_i32, %c0_i32_0 : i32, i32
  }
  func.func @transform_2(%arg0: i32, %arg1: i32) -> (i32, i32) {
    %c0_i32 = arith.constant 0 : i32
    %c0_i32_0 = arith.constant 0 : i32
    %c0_i32_1 = arith.constant 0 : i32
    return %c0_i32, %c0_i32_0 : i32, i32
  }
  func.func @transform_3(%arg0: i32, %arg1: i32) -> (i32, i32) {
    %c0_i32 = arith.constant 0 : i32
    %c0_i32_0 = arith.constant 0 : i32
    %c0_i32_1 = arith.constant 0 : i32
    return %c0_i32, %c0_i32_0 : i32, i32
  }
  func.func @transform_4(%arg0: i32, %arg1: i32) -> (i32, i32) {
    %c0_i32 = arith.constant 0 : i32
    %c0_i32_0 = arith.constant 0 : i32
    %c0_i32_1 = arith.constant 0 : i32
    return %c0_i32, %c0_i32_0 : i32, i32
  }
  func.func @transform_5(%arg0: i32, %arg1: i32) -> (i32, i32, i32) {
    %c0_i32 = arith.constant 0 : i32
    %c0_i32_0 = arith.constant 0 : i32
    return %arg0, %arg1, %c0_i32 : i32, i32, i32
  }
  func.func @transform_6(%arg0: i32, %arg1: i32) -> (i32, i32, i32) {
    %c0_i32 = arith.constant 0 : i32
    %c0_i32_0 = arith.constant 0 : i32
    return %arg0, %arg1, %c0_i32 : i32, i32, i32
  }
}

</mosaic_0001>

<bundles_post_ra>
// kernel: _chunker_device.1
= control target key start
LH: loop header
LB: loop body
LE: loop exit
PB: predicated region body
PF: predicated region fallthrough
CT: control target
= control target key end

     0   :  { %s785_s21 = smov 0   ;;  %s787_s22 = smov 0   ;;  %s897_s0 = inlined_call_operand.vmem [shape: f32[2,24,32], index: 0, kind: input, shape index: {}]   ;;  %s898_s1 = inlined_call_operand.vmem [shape: bf16[32,32], index: 1, kind: input, shape index: {}]   ;;  %s899_s2 = inlined_call_operand.vmem [shape: f32[1,32], index: 2, kind: input, shape index: {}]   ;;  %s900_s3 = inlined_call_operand.vmem [shape: bf16[32,32], index: 3, kind: input, shape index: {}]   ;;  %s901_s4 = inlined_call_operand.vmem [shape: f32[1,32], index: 4, kind: input, shape index: {}]   ;;  %s902_s5 = inlined_call_operand.vmem [shape: bf16[2,3,32], index: 5, kind: output, shape index: {0}]   ;;  %s903_s6 = inlined_call_operand.vmem [shape: s32[2,3,1], index: 6, kind: output, shape index: {1}]  }
   0x1   :  { %s789_s23 = smov 0  }
   0x2 LB: > { %s29_s24 = sadd.s32 1, %s743_s22  ;;  %p645_p0 = scmp.ge.s32.totalorder %s747_s23, 1  ;;  %s747_s23 = sphi %s789_s23, %s17_s23   ;;  %s743_s22 = sphi %s787_s22, %s909_s22   ;;  %s739_s21 = sphi %s785_s21, %s908_s21  }
   0x3   : > { %p31_p1 = scmp.ge.s32.totalorder %s29_s24, 2  ;;  %p238_p2 = scmp.lt.s32.totalorder %s747_s23, 3 }
   0x5   : > { %s911_s24 = smov (%p31_p1, %s29_s24), 0  ;;  %p239_p3 = pnand %p645_p0, %p238_p2 }
   0x6   : > { %p282_p4 = scmp.lt.s32.totalorder (!%p239_p3), %s739_s21, 1 }
   0x7   : > { %242 = sbr.rel (%p239_p3) target bundleno = 453 (0x1c5), region = 40 }
   0xc   : > { %s913_s21 = smov (!%p282_p4, %s739_s21), 1  ;;  %vm312_vm0 = vcmask 261120   ;;  %v673_v9 = vld [vmem:[%s898_s1 + $0x8] sm:$0xff]  ;;  %v672_v10 = vld [vmem:[%s898_s1] sm:$0xff]  ;;  %v749_v13 = vmov 0.0   ;;  %vm438_vm7 = vcmask 1041409  }
   0xd   : > { %s676_s25 = smul.u32 24, %s913_s21  ;;  %464 = vmatpush.bf16.msra.mxu0 %v673_v9  ;;  %s648_s9 = sshll.u32 %s913_s21, 2  ;;  %vm440_vm8 = vcmask 1042434   ;;  %vm521_vm9 = vcmask 2048  }
   0xe   : > { %s304_s12 = scalar_lea.vmem %s903_s6, %s648_s9  ;;  %s647_s19 = sshll.u32 %s913_s21, 1 }
   0xf   : > { %s289_s28 = scalar_lea.vmem %s897_s0, %s676_s25 }
  0x10   : > { %v308_v0 = vld [vmem:[%s289_s28 + $0x10] sm:$0xff]  ;;  %v306_v1 = vld [vmem:[%s289_s28] sm:$0xff]  ;;  %v307_v4 = vld [vmem:[%s289_s28 + $0x8] sm:$0xff]  ;;  %s297_s28 = scalar_lea.vmem %s902_s5, %s647_s19 }
  0x11   : > { %v311_v2 = vand.u32 2147483647, %v308_v0  ;;  %v309_v3 = vand.u32 2147483647, %v306_v1  ;;  %v310_v7 = vand.u32 2147483647, %v307_v4  ;;  %465 = vmatpush.bf16.msra.mxu0 %v672_v10 }
  0x13   : > { %v319_v5 = vsel %vm312_vm0, %v311_v2, 0.0  ;;  %v313_v6 = vsel %vm312_vm0, %v309_v3, 0.0  ;;  %v316_v8 = vsel %vm312_vm0, %v310_v7, 0.0 }
  0x14   : > { %320 = vadd.xlane.f32.xlu1 %v319_v5  ;;  %314 = vadd.xlane.f32.xlu0 %v313_v6 }
  0x1c   : > { %317 = vadd.xlane.f32.xlu0 %v316_v8 }
  0x87   : > { %v321_v11 = vpop.xlane.xlu1 %320  ;;  %v315_v12 = vpop.xlane.xlu0 %314 }
  0x88   : > { %vm324_vm1 = vcmp.ne.f32.partialorder %v321_v11, 0.0  ;;  %vm322_vm2 = vcmp.ne.f32.partialorder %v315_v12, 0.0 }
  0x89   : > { %v651_v14 = vsel %vm324_vm1, 1.0, %v749_v13  ;;  %v649_v15 = vsel %vm322_vm2, 1.0, %v749_v13 }
  0x8a   : > { %v367_v16 = vrot.slane %v651_v14, 4  ;;  %v355_v17 = vrot.slane %v649_v15, 4  ;;  %v331_v22 = vmul.f32 %v649_v15, %v306_v1  ;;  %v333_v26 = vmul.f32 %v651_v14, %v308_v0 }
  0x8c   : > { %v368_v18 = vadd.f32 %v651_v14, %v367_v16  ;;  %v356_v19 = vadd.f32 %v649_v15, %v355_v17  ;;  %v334_v31 = vsel %vm312_vm0, %v331_v22, 0.0  ;;  %v348_v34 = vsel %vm312_vm0, %v333_v26, 0.0 }
  0x8d   : > { %v335_v38 = vrot.slane %v334_v31, 4  ;;  %v349_v40 = vrot.slane %v348_v34, 4 }
  0x8e   : > { %v369_v20 = vrot.slane %v368_v18, 2  ;;  %v357_v21 = vrot.slane %v356_v19, 2 }
  0x8f   : > { %v318_v23 = vpop.xlane.xlu0 %317  ;;  %v336_v43 = vadd.f32 %v335_v38, %v334_v31  ;;  %v350_v45 = vadd.f32 %v349_v40, %v348_v34 }
  0x90   : > { %v370_v24 = vadd.f32 %v369_v20, %v368_v18  ;;  %v358_v25 = vadd.f32 %v357_v21, %v356_v19  ;;  %vm323_vm3 = vcmp.ne.f32.partialorder %v318_v23, 0.0 }
  0x91   : > { %v650_v27 = vsel %vm323_vm3, 1.0, %v749_v13  ;;  %v337_v50 = vrot.slane %v336_v43, 2  ;;  %v351_v57 = vrot.slane %v350_v45, 2 }
  0x92   : > { %v371_v28 = vrot.slane %v370_v24, 1  ;;  %v359_v29 = vrot.slane %v358_v25, 1  ;;  %v361_v30 = vrot.slane %v650_v27, 4  ;;  %v332_v35 = vmul.f32 %v650_v27, %v307_v4 }
  0x93   : > { %v338_v63 = vadd.f32 %v337_v50, %v336_v43  ;;  %v352_v7 = vadd.f32 %v351_v57, %v350_v45  ;;  %v675_v57 = vld [vmem:[%s900_s3 + $0x8] sm:$0xff] }
  0x94   : > { %v372_v32 = vadd.f32 %v371_v28, %v370_v24  ;;  %v360_v33 = vadd.f32 %v359_v29, %v358_v25  ;;  %v362_v36 = vadd.f32 %v650_v27, %v361_v30  ;;  %v341_v41 = vsel %vm312_vm0, %v332_v35, 0.0  ;;  %502 = vmatpush.bf16.msra.mxu1 %v675_v57 }
  0x95   : > { %v342_v46 = vrot.slane %v341_v41, 4  ;;  %v339_v11 = vrot.slane %v338_v63, 1  ;;  %v353_v27 = vrot.slane %v352_v7, 1 }
  0x96   : > { %v820_v37 = vmax.f32 %v372_v32, 1.0  ;;  %v822_v39 = vmax.f32 %v360_v33, 1.0  ;;  %v363_v42 = vrot.slane %v362_v36, 2  ;;  %v688_v49 = vceil.f32 %v372_v32 }
  0x97   : > { %v678_v51 = vceil.f32 %v360_v33  ;;  %v679_v52 = vfloor.f32 %v360_v33  ;;  %v689_v54 = vfloor.f32 %v372_v32  ;;  %vm677_vm4 = vcmp.lt.s32.totalorder %v360_v33, 0 }
  0x98   : > { %719 = vrcp.f32 %v820_v37  ;;  %v364_v44 = vadd.f32 %v363_v42, %v362_v36  ;;  %vm687_vm5 = vcmp.lt.s32.totalorder %v372_v32, 0  ;;  %v343_v58 = vadd.f32 %v342_v46, %v341_v41 }
  0x99   : > { %721 = vrcp.f32 %v822_v39  ;;  %v680_v2 = vsel %vm677_vm4, %v678_v51, %v679_v52  ;;  %v690_v3 = vsel %vm687_vm5, %v688_v49, %v689_v54  ;;  %v387_v14 = vand.u32 2147483648, %v822_v39 }
  0x9a   : > { %v365_v47 = vrot.slane %v364_v44, 1  ;;  %v344_v8 = vrot.slane %v343_v58, 2  ;;  %v681_v9 = vcvt.f32.s32 %v680_v2  ;;  %v691_v13 = vcvt.f32.s32 %v690_v3 }
  0x9b   : > { %vm381_vm12 = vweird.f32 %v822_v39  ;;  %v385_v17 = vand.u32 2147483647, %v822_v39  ;;  %v417_v18 = vand.u32 2147483648, %v820_v37  ;;  %vm411_vm14 = vweird.f32 %v820_v37 }
  0x9c   : > { %v366_v55 = vadd.f32 %v365_v47, %v364_v44  ;;  %v345_v21 = vadd.f32 %v344_v8, %v343_v58  ;;  %v415_v23 = vand.u32 2147483647, %v820_v37  ;;  %v388_v28 = vor.u32 1.1754944e-38, %v387_v14  ;;  %v674_v58 = vld [vmem:[%s900_s3] sm:$0xff] }
  0x9d   : > { %v340_v30 = vadd.f32 %v339_v11, %v338_v63  ;;  %vm386_vm1 = vcmp.eq.f32.partialorder %v385_v17, 8.507059e+37  ;;  %v418_v32 = vor.u32 1.1754944e-38, %v417_v18  ;;  %503 = vmatpush.bf16.msra.mxu1 %v674_v58 }
  0x9e   : > { %v827_v48 = vpop.eup %719  ;;  %v832_v60 = vmax.f32 %v366_v55, 1.0  ;;  %vm682_vm6 = vcmp.lt.s32.totalorder %v366_v55, 0  ;;  %v683_v61 = vceil.f32 %v366_v55  ;;  %v684_v62 = vfloor.f32 %v366_v55 }
  0x9f   : > { %v722_v53 = vpop.eup %721  ;;  %v407_v56 = vmul.f32 %v827_v48, %v820_v37  ;;  %vm412_vm11 = vweird.f32 %v827_v48  ;;  %v346_v33 = vrot.slane %v345_v21, 1  ;;  %vm416_vm2 = vcmp.eq.f32.partialorder %v415_v23, 8.507059e+37 }
  0xa0   : > { %v377_v59 = vmul.f32 %v722_v53, %v822_v39  ;;  %723 = vrcp.f32 %v832_v60  ;;  %v685_v6 = vsel %vm682_vm6, %v683_v61, %v684_v62  ;;  %vm382_vm10 = vweird.f32 %v722_v53  ;;  %vm858_vm15 = vmor %vm411_vm14, %vm412_vm11 }
  0xa1   : > { %v408_v1 = vsub.f32 1.0, %v407_v56  ;;  %v686_v10 = vcvt.f32.s32 %v685_v6  ;;  %vm848_vm13 = vmor %vm381_vm12, %vm382_vm10  ;;  %v402_v35 = vand.u32 2147483648, %v832_v60  ;;  %v400_v37 = vand.u32 2147483647, %v832_v60 }
  0xa2   : > { %v378_v0 = vsub.f32 1.0, %v377_v59  ;;  %v354_v39 = vadd.f32 %v353_v27, %v352_v7  ;;  %vm396_vm4 = vweird.f32 %v832_v60  ;;  %v347_v44 = vadd.f32 %v346_v33, %v345_v21  ;;  %v717_v59 = vld [vmem:[%s899_s2] ss:$0 sm:$0xff] }
  0xa3   : > { %v409_v5 = vmul.f32 %v827_v48, %v408_v1  ;;  %v519_v16 = vsel %vm438_vm7, %v686_v10, %v681_v9  ;;  %v403_v42 = vor.u32 1.1754944e-38, %v402_v35  ;;  %vm401_vm6 = vcmp.eq.f32.partialorder %v400_v37, 8.507059e+37  ;;  %v718_v1 = vld [vmem:[%s901_s4] ss:$0 sm:$0xff] }
  0xa4   : > { %v379_v4 = vmul.f32 %v722_v53, %v378_v0  ;;  %v520_v19 = vsel %vm440_vm8, %v691_v13, %v519_v16 }
  0xa5   : > { %v410_v15 = vadd.f32 %v827_v48, %v409_v5  ;;  %522 = vst.msk [vmem:[%s304_s12] sm:$0x7] %vm521_vm9, %v520_v19 }
  0xa6   : > { %v380_v12 = vadd.f32 %v722_v53, %v379_v4  ;;  %v724_v20 = vpop.eup %723  ;;  %v513_v4 = vld [vmem:[%s297_s28] sm:$0x3] }
  0xa7   : > { %v392_v25 = vmul.f32 %v724_v20, %v832_v60  ;;  %v414_v29 = vsel %vm858_vm15, %v827_v48, %v410_v15  ;;  %vm397_vm3 = vweird.f32 %v724_v20 }
  0xa8   : > { %v384_v24 = vsel %vm848_vm13, %v722_v53, %v380_v12  ;;  %v419_v38 = vsel %vm416_vm2, %v418_v32, %v414_v29  ;;  %vm398_vm5 = vmor %vm396_vm4, %vm397_vm3 }
  0xa9   : > { %v393_v31 = vsub.f32 1.0, %v392_v25  ;;  %v389_v34 = vsel %vm386_vm1, %v388_v28, %v384_v24  ;;  %v420_v43 = vmul.f32 %v419_v38, %v354_v39 }
  0xaa   : > { %v390_v40 = vmul.f32 %v389_v34, %v340_v30 }
  0xab   : > { %v394_v36 = vmul.f32 %v724_v20, %v393_v31  ;;  %v423_v49 = vpack.c.bf16 %v420_v43, %v420_v43 }
  0xac   : > { %v421_v48 = vpack.c.bf16 %v390_v40, %v390_v40 }
  0xad   : > { %v395_v41 = vadd.f32 %v724_v20, %v394_v36  ;;  %v437_v53 = vunpack.c.l.b16 %v423_v49 }
  0xae   : > { %v435_v51 = vunpack.c.l.b16 %v421_v48 }
  0xaf   : > { %v399_v45 = vsel %vm398_vm5, %v724_v20, %v395_v41 }
  0xb0   : > { %v404_v46 = vsel %vm401_vm6, %v403_v42, %v399_v45 }
  0xb1   : > { %v405_v47 = vmul.f32 %v404_v46, %v347_v44 }
  0xb3   : > { %v422_v50 = vpack.c.bf16 %v405_v47, %v405_v47 }
  0xb5   : > { %v436_v52 = vunpack.c.l.b16 %v422_v50 }
  0xb7   : > { %v439_v54 = vsel %vm438_vm7, %v436_v52, %v435_v51  ;;  %vm510_vm7 = vcmask 254976  }
  0xb8   : > { %v441_v55 = vsel %vm440_vm8, %v437_v53, %v439_v54  ;;  %vm511_vm8 = vsmask.f32 1280 }
  0xb9   : > { %v442_v56 = vpack.c.b16 %v441_v55, %v441_v55  ;;  %vm512_vm9 = vmand %vm510_vm7, %vm511_vm8 }
  0xbb   : > { %660 = vmatmul.msk.bf16.vlgmr.msra.gmra.mxu0 %vm312_vm0, %v442_v56 }
 0x138   : > { %v467_v60 = vpop.f32.mrf.mxu0 }
 0x139   : > { %v468_v61 = vadd.f32 %v717_v59, %v467_v60 }
 0x13b   : > { %v471_v62 = vmax.f32 %v468_v61, 0.0 }
 0x13d   : > { %v472_v63 = vpack.c.bf16 %v471_v62, %v471_v62 }
 0x13f   : > { %669 = vmatmul.msk.bf16.vlgmr.msra.gmra.mxu1 %vm312_vm0, %v472_v63 }
 0x140   : > { %v469_v0 = vpop.f32.mrf.mxu0 }
 0x1bc   : > { %v505_v2 = vpop.f32.mrf.mxu1 }
 0x1bd   : > { %v506_v3 = vadd.f32 %v718_v1, %v505_v2 }
 0x1bf   : > { %v509_v5 = vpack.c.bf16 %v506_v3, %v506_v3 }
 0x1c1   : > { %v514_v6 = vsel %vm512_vm9, %v509_v5, %v513_v4 }
 0x1c2   : > { %515 = vst [vmem:[%s297_s28] sm:$0x3] %v514_v6 }
 0x1c4   : > { %v507_v7 = vpop.f32.mrf.mxu1 }
 0x1c5 PF: > { %s17_s23 = sadd.s32 1, %s747_s23   ;;  %s908_s21 = smov %s743_s22 }
 0x1c6   : > { %p14_p5 = scmp.ge.s32.totalorder %s17_s23, 4   ;;  %s909_s22 = smov %s911_s24 }
 0x1c8   :  { %16 = sbr.rel (!%p14_p5) target bundleno = 2 (0x2), region = 82 }

</bundles_post_ra>
